<compile_context>
chip_gen: v7x
topology: tpu7x:2x2x1
jax: 0.10.0
libtpu: 0.0.40
codegen_flags: <defaults>
</compile_context>

<pallas_src>
import jax
import jax.numpy as jnp
from jax.experimental import pallas as pl
from jax.experimental.pallas import tpu as pltpu


# ----------------------------------------------------------------------------
# Hardware-aware tile planning
# ----------------------------------------------------------------------------
def _pad8(x):
    return ((x + 7) // 8) * 8


def _tpu_limits():
    """(vmem_capacity_bytes, num_tensorcores) with conservative fallbacks."""
    vmem_cap = 64 << 20      # assume smallest per-TC VMEM (v7x) if query fails
    n_cores = 2              # assume dual-TensorCore worst case
    try:
        info = pltpu.get_tpu_info()
        cap = getattr(info, "vmem_capacity_bytes", None)
        if cap:
            vmem_cap = int(cap)
        for name in ("num_cores", "tensor_cores_per_chip", "num_tensorcores",
                     "cores_per_chip"):
            v = getattr(info, name, None)
            if v:
                n_cores = int(v)
                break
    except Exception:
        pass
    return vmem_cap, n_cores


def _vmem_plan():
    """Double-buffered working-set budget + explicit vmem limit per generation.

    v5e/v6e (128 MiB VMEM) -> 32 MiB budget; v7x (64 MiB per TC) -> 16 MiB.
    """
    vmem_cap, n_cores = _tpu_limits()
    budget = max(8 << 20, min(vmem_cap // 4, 32 << 20))
    vmem_limit = min(vmem_cap, 2 * budget)
    return budget, vmem_limit, n_cores


_LANE_TILE_CAP = 4096  # max lanes per block (multiple of 128)


def _choose_tiles(n_rows, hw, bytes_per_lane_per_row, *, budget, min_steps):
    """Pick (tb, tl): row (frame) block and 128-aligned lane block.

    * tl is a multiple of 128 (or the full HW when HW < 128) -> lane-dense,
      unmasked stores; Pallas masks the ragged last lane block if HW % tl != 0.
    * tb is the largest frame count whose double-buffered footprint fits the
      budget; never falls back to "the whole array".
    * total grid steps are kept >= min_steps (2 * num TensorCores) so both
      cores of a v7x megacore get work AND something to prefetch.
    """
    if hw < 128:
        tl = hw                                   # full dim (always legal)
    else:
        tl = max(128, min((hw // 128) * 128, _LANE_TILE_CAP))
    lane_steps = pl.cdiv(hw, tl)

    per_row_bytes_2buf = 2 * bytes_per_lane_per_row * tl
    tb = max(1, min(n_rows, budget // per_row_bytes_2buf))

    need_row_steps = pl.cdiv(min_steps, lane_steps)
    if need_row_steps > 1:
        tb = min(tb, max(1, pl.cdiv(n_rows, need_row_steps)))
    return tb, tl


# ----------------------------------------------------------------------------
# Kernel 1: masked blend  out = imgs * m + refs * (1 - m) == refs + m*(imgs-refs)
#   imgs/refs/out blocks: (tb, C, tl); mask block: (tb, 1, tl) -> implicit
#   channel broadcast, no full-width mask temporary, mask cast done in-kernel.
# ----------------------------------------------------------------------------
def _blend_kernel(img_ref, mask_ref, ref_ref, out_ref):
    m = mask_ref[...].astype(out_ref.dtype)          # (tb, 1, tl)
    img = img_ref[...]                                # (tb, C, tl)
    ref = ref_ref[...]
    out_ref[...] = ref + m * (img - ref)              # fused form, 1 broadcast mul


def masked_blend(imgs, masks, ref_frames):
    """imgs/ref_frames: (B, T, C, H, W); masks: (B, T, 1, H, W)."""
    B, T, C, H, W = imgs.shape
    HW, N = H * W, B * T
    dtype = imgs.dtype
    bpe = jnp.dtype(dtype).itemsize
    mbpe = jnp.dtype(masks.dtype).itemsize

    imgs3 = imgs.reshape(N, C, HW)
    refs3 = ref_frames.reshape(N, C, HW)
    masks3 = masks.reshape(N, 1, HW)                  # native dtype; cast in-kernel

    budget, vmem_limit, n_cores = _vmem_plan()
    # per frame, per lane, sublane-padded VMEM bytes across all streams
    bytes_per_lane_per_row = 3 * _pad8(C) * bpe + _pad8(1) * mbpe
    tb, tl = _choose_tiles(N, HW, bytes_per_lane_per_row,
                           budget=budget, min_steps=2 * n_cores)
    grid = (pl.cdiv(N, tb), pl.cdiv(HW, tl))

    cost = pl.CostEstimate(
        flops=3 * N * C * HW,
        transcendentals=0,
        bytes_accessed=N * (3 * C * HW * bpe + HW * mbpe))

    out = pl.pallas_call(
        _blend_kernel,
        out_shape=jax.ShapeDtypeStruct((N, C, HW), dtype),
        grid=grid,
        in_specs=[
            pl.BlockSpec((tb, C, tl), lambda i, l: (i, 0, l)),
            pl.BlockSpec((tb, 1, tl), lambda i, l: (i, 0, l)),
            pl.BlockSpec((tb, C, tl), lambda i, l: (i, 0, l)),
        ],
        out_specs=pl.BlockSpec((tb, C, tl), lambda i, l: (i, 0, l)),
        compiler_params=pltpu.CompilerParams(
            dimension_semantics=("parallel", "parallel"),
            vmem_limit_bytes=vmem_limit),
        cost_estimate=cost,
    )(imgs3, masks3, refs3)
    return out.reshape(B, T, C, H, W)


# ----------------------------------------------------------------------------
# Kernel 2: channel concat  out = cat([imgs, masks, guidances], dim=channel)
#   Output block (tb, C+2, tl); channel axis rides the sublane axis so every
#   channel segment is lane-dense regardless of whether HW % 128 == 0.
#   When guidance is None the zero channel is written in-kernel (no extra HBM
#   allocation / DMA stream).
# ----------------------------------------------------------------------------
def _concat_kernel(img_ref, mask_ref, guid_ref, out_ref):
    c = img_ref.shape[1]
    out_ref[:, 0:c, :] = img_ref[...]
    out_ref[:, c:c + 1, :] = mask_ref[...].astype(out_ref.dtype)
    out_ref[:, c + 1:c + 2, :] = guid_ref[...].astype(out_ref.dtype)


def _concat_zero_guid_kernel(img_ref, mask_ref, out_ref):
    c = img_ref.shape[1]
    out_ref[:, 0:c, :] = img_ref[...]
    out_ref[:, c:c + 1, :] = mask_ref[...].astype(out_ref.dtype)
    out_ref[:, c + 1:c + 2, :] = jnp.zeros(mask_ref.shape, out_ref.dtype)


def concat_inputs(imgs, masks, guidances=None):
    """imgs: (B,T,3,H,W); masks (and optional guidances): (B,T,1,H,W) -> (B,T,5,H,W)."""
    # TODO(synk): ideally this concat is fused into the first conv of
    # SNTemporalPatchGANDiscriminator (eliminating one full HBM round trip),
    # but that module's body is not provided.
    B, T, C, H, W = imgs.shape
    HW, N = H * W, B * T
    nc_out = C + 2
    dtype = imgs.dtype
    bpe = jnp.dtype(dtype).itemsize
    mbpe = jnp.dtype(masks.dtype).itemsize
    gbpe = jnp.dtype(guidances.dtype).itemsize if guidances is not None else 0

    imgs3 = imgs.reshape(N, C, HW)
    masks3 = masks.reshape(N, 1, HW)

    budget, vmem_limit, n_cores = _vmem_plan()
    bytes_per_lane_per_row = (_pad8(C) * bpe + _pad8(1) * mbpe
                              + (_pad8(1) * gbpe if guidances is not None else 0)
                              + _pad8(nc_out) * bpe)
    tb, tl = _choose_tiles(N, HW, bytes_per_lane_per_row,
                           budget=budget, min_steps=2 * n_cores)
    grid = (pl.cdiv(N, tb), pl.cdiv(HW, tl))

    read_bytes = N * HW * (C * bpe + mbpe + gbpe)
    cost = pl.CostEstimate(flops=0, transcendentals=0,
                           bytes_accessed=read_bytes + N * HW * nc_out * bpe)

    common = dict(
        out_shape=jax.ShapeDtypeStruct((N, nc_out, HW), dtype),
        grid=grid,
        out_specs=pl.BlockSpec((tb, nc_out, tl), lambda i, l: (i, 0, l)),
        compiler_params=pltpu.CompilerParams(
            dimension_semantics=("parallel", "parallel"),
            vmem_limit_bytes=vmem_limit),
        cost_estimate=cost,
    )

    if guidances is None:
        out = pl.pallas_call(
            _concat_zero_guid_kernel,
            in_specs=[
                pl.BlockSpec((tb, C, tl), lambda i, l: (i, 0, l)),
                pl.BlockSpec((tb, 1, tl), lambda i, l: (i, 0, l)),
            ],
            **common,
        )(imgs3, masks3)
    else:
        guid3 = guidances.reshape(N, 1, HW)
        out = pl.pallas_call(
            _concat_kernel,
            in_specs=[
                pl.BlockSpec((tb, C, tl), lambda i, l: (i, 0, l)),
                pl.BlockSpec((tb, 1, tl), lambda i, l: (i, 0, l)),
                pl.BlockSpec((tb, 1, tl), lambda i, l: (i, 0, l)),
            ],
            **common,
        )(imgs3, masks3, guid3)

    return out.reshape(B, T, nc_out, H, W)


# ----------------------------------------------------------------------------
# JAX-side port of VideoInpaintingModel (forward semantics only)
# ----------------------------------------------------------------------------
class VideoInpaintingModel:
    def __init__(self, opts, nc_in=5, nc_out=3, nc_ref=3):
        self.opts = opts
        self.nc_in = nc_in
        self.nc_out = nc_out
        self.nc_ref = nc_ref
        # TODO(synk): Generator and SNTemporalPatchGANDiscriminator class
        # definitions were not provided with the module, so their conv stacks /
        # parameters cannot be instantiated or reproduced here.

    def forward(self, imgs, masks, ref_frames, guidances=None, model="G"):
        if model == "G":
            masked_imgs = masked_blend(imgs, masks, ref_frames)
            # TODO(synk): output = self.generator(masked_imgs, ref_frames, masks, guidances)
            return masked_imgs
        elif model == "D_t":
            input_imgs = concat_inputs(imgs, masks, guidances)     # (B, T, 5, H, W)
            # TODO(synk): output = self.temporal_discriminator(input_imgs)
            return input_imgs
        elif model == "D_s":
            input_imgs = concat_inputs(imgs, masks, guidances)     # (B, T, 5, H, W)
            in_shape = input_imgs.shape
            input_imgs = input_imgs.reshape(
                (in_shape[0] * in_shape[1],) + in_shape[2:])        # (B*T, 5, H, W)
            # TODO(synk): output = self.spatial_discriminator(input_imgs)
            #             output = output.view(in_shape[0], in_shape[1], -1)
            return input_imgs
        else:
            raise ValueError(
                f'forwarding model should be "G", "D_t", or "D_s", but got {model}')


if __name__ == "__main__":
    # Small shapes consistent with the module's video conventions:
    # B=2 videos, T=4 frames, 3 image channels, 1 mask channel, 16x16 spatial.
    B, T, C, H, W = 2, 4, 3, 16, 16
    key = jax.random.PRNGKey(0)
    k1, k2, k3, k4 = jax.random.split(key, 4)
    imgs = jax.random.normal(k1, (B, T, C, H, W), dtype=jnp.float32)
    ref_frames = jax.random.normal(k2, (B, T, C, H, W), dtype=jnp.float32)
    masks = (jax.random.uniform(k3, (B, T, 1, H, W)) > 0.5).astype(jnp.float32)
    guidances = jax.random.normal(k4, (B, T, 1, H, W), dtype=jnp.float32)

    opts = {"nf": 32, "norm": "SN", "bias": True, "conv_by": "3d",
            "conv_type": "gated"}
    model = VideoInpaintingModel(opts)

    # model == 'G' path (Pallas masked-blend hot path)
    out_g = model.forward(imgs, masks, ref_frames, model="G")
    out_g = jax.block_until_ready(out_g)
    ref_g = imgs * masks + ref_frames * (1.0 - masks)
    assert out_g.shape == (B, T, C, H, W)
    assert jnp.allclose(out_g, ref_g, atol=1e-6), "masked blend mismatch"

    # model == 'D_t' path, no guidance (zero channel written in-kernel)
    out_dt = model.forward(imgs, masks, ref_frames, model="D_t")
    out_dt = jax.block_until_ready(out_dt)
    ref_dt = jnp.concatenate([imgs, masks, jnp.zeros_like(masks)], axis=2)
    assert out_dt.shape == (B, T, 5, H, W)
    assert jnp.allclose(out_dt, ref_dt, atol=1e-6), "D_t concat mismatch"

    # model == 'D_t' path with explicit guidances
    out_dtg = model.forward(imgs, masks, ref_frames, guidances=guidances, model="D_t")
    out_dtg = jax.block_until_ready(out_dtg)
    ref_dtg = jnp.concatenate([imgs, masks, guidances], axis=2)
    assert jnp.allclose(out_dtg, ref_dtg, atol=1e-6), "D_t concat (guidance) mismatch"

    # model == 'D_s' path (concat + flatten batch*time)
    out_ds = model.forward(imgs, masks, ref_frames, model="D_s")
    out_ds = jax.block_until_ready(out_ds)
    assert out_ds.shape == (B * T, 5, H, W)
    assert jnp.allclose(out_ds, ref_dt.reshape(B * T, 5, H, W), atol=1e-6), \
        "D_s concat/reshape mismatch"

    print("KERNEL_OK")
</pallas_src>

<mosaic_0001>
module attributes {stable_mosaic.version = 11 : i64} {
  func.func @_blend_kernel(%arg0: i32, %arg1: i32, %arg2: memref<2x3x256xf32, #tpu.memory_space<vmem>>, %arg3: memref<2x1x256xf32, #tpu.memory_space<vmem>>, %arg4: memref<2x3x256xf32, #tpu.memory_space<vmem>>, %arg5: memref<2x3x256xf32, #tpu.memory_space<vmem>>) attributes {dimension_semantics = [#tpu.dimension_semantics<parallel>, #tpu.dimension_semantics<parallel>], iteration_bounds = array<i64: 4, 1>, scalar_prefetch = 0 : i64, scratch_operands = 0 : i64, tpu.core_type = #tpu.core_type<tc>, window_params = [{transform_indices = @transform_0, window_bounds = array<i64: 2, 3, 256>}, {transform_indices = @transform_1, window_bounds = array<i64: 2, 1, 256>}, {transform_indices = @transform_2, window_bounds = array<i64: 2, 3, 256>}, {transform_indices = @transform_3, window_bounds = array<i64: 2, 3, 256>}]} {
    %c0 = arith.constant 0 : index
    %c0_0 = arith.constant 0 : index
    %c0_1 = arith.constant 0 : index
    %0 = vector.load %arg3[%c0, %c0_0, %c0_1] : memref<2x1x256xf32, #tpu.memory_space<vmem>>, vector<2x1x256xf32>
    %c0_2 = arith.constant 0 : index
    %c0_3 = arith.constant 0 : index
    %c0_4 = arith.constant 0 : index
    %1 = vector.load %arg2[%c0_2, %c0_3, %c0_4] : memref<2x3x256xf32, #tpu.memory_space<vmem>>, vector<2x3x256xf32>
    %c0_5 = arith.constant 0 : index
    %c0_6 = arith.constant 0 : index
    %c0_7 = arith.constant 0 : index
    %2 = vector.load %arg4[%c0_5, %c0_6, %c0_7] : memref<2x3x256xf32, #tpu.memory_space<vmem>>, vector<2x3x256xf32>
    %3 = arith.subf %1, %2 : vector<2x3x256xf32>
    %4 = vector.broadcast %0 : vector<2x1x256xf32> to vector<2x3x256xf32>
    %5 = arith.mulf %4, %3 : vector<2x3x256xf32>
    %6 = arith.addf %2, %5 : vector<2x3x256xf32>
    %c0_8 = arith.constant 0 : index
    %c0_9 = arith.constant 0 : index
    %c0_10 = arith.constant 0 : index
    %7 = vector.load %arg5[%c0_8, %c0_9, %c0_10] : memref<2x3x256xf32, #tpu.memory_space<vmem>>, vector<2x3x256xf32>
    tpu.vector_store %arg5[%c0_8, %c0_9, %c0_10], %6 {strides = array<i32>} : memref<2x3x256xf32, #tpu.memory_space<vmem>>, vector<2x3x256xf32>,
    return
  }
  func.func @transform_0(%arg0: i32, %arg1: i32) -> (i32, i32, i32) {
    %c0_i32 = arith.constant 0 : i32
    %c0_i32_0 = arith.constant 0 : i32
    return %arg0, %c0_i32, %arg1 : i32, i32, i32
  }
  func.func @transform_1(%arg0: i32, %arg1: i32) -> (i32, i32, i32) {
    %c0_i32 = arith.constant 0 : i32
    %c0_i32_0 = arith.constant 0 : i32
    return %arg0, %c0_i32, %arg1 : i32, i32, i32
  }
  func.func @transform_2(%arg0: i32, %arg1: i32) -> (i32, i32, i32) {
    %c0_i32 = arith.constant 0 : i32
    %c0_i32_0 = arith.constant 0 : i32
    return %arg0, %c0_i32, %arg1 : i32, i32, i32
  }
  func.func @transform_3(%arg0: i32, %arg1: i32) -> (i32, i32, i32) {
    %c0_i32 = arith.constant 0 : i32
    %c0_i32_0 = arith.constant 0 : i32
    return %arg0, %c0_i32, %arg1 : i32, i32, i32
  }
}

</mosaic_0001>

<bundles_post_ra>
// kernel: tpu_custom_call.1
= control target key start
LH: loop header
LB: loop body
LE: loop exit
PB: predicated region body
PF: predicated region fallthrough
CT: control target
= control target key end

     0   :  { %s561_s12 = smov 0   ;;  %s563_s13 = smov 0   ;;  %s600_s0 = inlined_call_operand.vmem [shape: f32[8,3,256], index: 0, kind: input, shape index: {}]   ;;  %s601_s1 = inlined_call_operand.vmem [shape: f32[8,1,256], index: 1, kind: input, shape index: {}]   ;;  %s602_s2 = inlined_call_operand.vmem [shape: f32[8,3,256], index: 2, kind: input, shape index: {}]   ;;  %s603_s3 = inlined_call_operand.vmem [shape: f32[8,3,256], index: 3, kind: output, shape index: {}]  }
   0x1   :  { %s565_s14 = smov 0  }
   0x2 LB: > { %s25_s15 = sadd.s32 1, %s535_s13  ;;  %p476_p0 = scmp.ge.s32.totalorder %s539_s14, 1  ;;  %s539_s14 = sphi %s565_s14, %s13_s14   ;;  %s535_s13 = sphi %s563_s13, %s605_s13   ;;  %s531_s12 = sphi %s561_s12, %s604_s12  }
   0x3   : > { %p27_p1 = scmp.ge.s32.totalorder %s25_s15, 4  ;;  %p197_p2 = scmp.lt.s32.totalorder %s539_s14, 5 }
   0x5   : > { %s607_s15 = smov (%p27_p1, %s25_s15), 0  ;;  %p198_p3 = pnand %p476_p0, %p197_p2 }
   0x6   : > { %s477_s16 = sshll.u32 (!%p198_p3), %s531_s12, 1  ;;  %v307_v0 = vlaneseq (!%p198_p3) }
   0x7   : > { %201 = sbr.rel (%p198_p3) target bundleno = 31 (0x1f), region = 32  ;;  %p252_p4 = scmp.lt.s32.totalorder (!%p198_p3), %s477_s16, 7 }
   0x8   : > { %v308_v1 = vshrl.u32 (!%p198_p3), %v307_v0, 7 }
   0xa   : > { %v309_v2 = vsub.s32 (!%p198_p3), 0, %v308_v1  ;;  %v313_v3 = vsub.s32 (!%p198_p3), 1, %v308_v1 }
   0xe   : > { %s609_s16 = smov (!%p252_p4, %s477_s16), 7 }
   0xf   : > { %s490_s17 = sshll.u32 %s609_s16, 3  ;;  %s481_s18 = sshll.u32 %s609_s16, 1 }
  0x10   : > { %s259_s21 = scalar_lea.vmem %s600_s0, %s490_s17  ;;  %s270_s24 = scalar_lea.vmem %s601_s1, %s481_s18 }
  0x11   : > { %s282_s27 = scalar_lea.vmem %s602_s2, %s490_s17  ;;  %v297_v4 = vld [vmem:[%s270_s24] sm:$0x3]  ;;  %v298_v5 = vld [vmem:[%s270_s24 + $0x2] sm:$0x3]  ;;  %v300_v7 = vld [vmem:[%s259_s21 + $0x8] sm:$0x77]  ;;  %s294_s30 = scalar_lea.vmem %s603_s3, %s490_s17 }
  0x12   : > { %v299_v6 = vld [vmem:[%s259_s21] sm:$0x77]  ;;  %v302_v9 = vld [vmem:[%s282_s27 + $0x8] sm:$0x77]  ;;  %v310_v10 = vrot.slane %v297_v4, %v309_v2  ;;  %v318_v11 = vrot.slane %v298_v5, %v309_v2  ;;  %v314_v14 = vrot.slane %v297_v4, %v313_v3  ;;  %v322_v15 = vrot.slane %v298_v5, %v313_v3 }
  0x13   : > { %v301_v8 = vld [vmem:[%s282_s27] sm:$0x77]  ;;  %v304_v13 = vsub.f32 %v300_v7, %v302_v9 }
  0x14   : > { %v303_v12 = vsub.f32 %v299_v6, %v301_v8 }
  0x15   : > { %v330_v17 = vcombine.high %v304_v13, %v304_v13  ;;  %v335_v19 = vmul.f32 %v318_v11, %v304_v13 }
  0x16   : > { %v329_v16 = vcombine.high %v303_v12, %v303_v12  ;;  %v333_v18 = vmul.f32 %v310_v10, %v303_v12 }
  0x17   : > { %v336_v21 = vmul.f32 %v330_v17, %v322_v15 }
  0x18   : > { %v334_v20 = vmul.f32 %v329_v16, %v314_v14 }
  0x19   : > { %v342_v23 = vcombine.low %v335_v19, %v336_v21 }
  0x1a   : > { %v341_v22 = vcombine.low %v333_v18, %v334_v20 }
  0x1b   : > { %v346_v25 = vadd.f32 %v342_v23, %v302_v9 }
  0x1c   : > { %v345_v24 = vadd.f32 %v341_v22, %v301_v8 }
  0x1d   : > { %348 = vst [vmem:[%s294_s30 + $0x8] sm:$0x77] %v346_v25 }
  0x1e   : > { %347 = vst [vmem:[%s294_s30] sm:$0x77] %v345_v24 }
  0x1f PF: > { %s13_s14 = sadd.s32 1, %s539_s14   ;;  %s604_s12 = smov %s535_s13 }
  0x20   : > { %p10_p5 = scmp.ge.s32.totalorder %s13_s14, 6   ;;  %s605_s13 = smov %s607_s15 }
  0x22   :  { %12 = sbr.rel (!%p10_p5) target bundleno = 2 (0x2), region = 68 }

</bundles_post_ra>
